<compile_context>
chip_gen: v6e
topology: v6e:2x2x1
jax: 0.10.0
libtpu: 0.0.40
codegen_flags: <defaults>
</compile_context>

<pallas_src>
import functools

import jax
import jax.numpy as jnp
from jax import lax
from jax.experimental import pallas as pl
from jax.experimental.pallas import tpu as pltpu

EPS = 1e-5


@functools.lru_cache(maxsize=None)
def _vmem_limit_bytes():
    """Scoped-VMEM limit derived from the chip (~96 MiB on 128-MiB parts, ~48 MiB on v7x)."""
    cap = 64 * 1024 * 1024
    try:
        cap = int(getattr(pltpu.get_tpu_info(), "vmem_capacity_bytes", cap))
    except Exception:
        pass
    return max(32 * 1024 * 1024, min((cap * 3) // 4, 100 * 1024 * 1024))


# --------------------------- banded conv3x3 weights (built once, in XLA) ---------------------------
def _make_band_weights(wt, w):
    """(3,3,Cin,Cout) HWIO conv weights -> (3, W*Cin, W*Cout) bf16 banded matrices.

    Wband[ky][wi*Cin+ci, wo*Cout+co] = wt[ky, wi-wo+1, ci, co] if 0 <= wi-wo+1 <= 2 else 0,
    so the stride-1 / pad-1 3x3 conv becomes   out_row[h] = sum_ky xpad_row[h+ky] @ Wband[ky]
    on the lane-dense (rows, W*C) layout.  The W-edge zero padding is implicit in the band.
    """
    cin, cout = wt.shape[2], wt.shape[3]
    wi = jnp.arange(w)[:, None]
    wo = jnp.arange(w)[None, :]
    d = wi - wo + 1                                    # kx index, valid in [0, 2]
    valid = (d >= 0) & (d <= 2)
    band = wt[:, jnp.clip(d, 0, 2), :, :]              # (3, w, w, cin, cout)
    band = jnp.where(valid[None, :, :, None, None], band, 0.0)
    band = jnp.transpose(band, (0, 1, 3, 2, 4)).reshape(3, w * cin, w * cout)
    return band.astype(jnp.bfloat16)


# --------------------------------- Pass 1 / Pass 2 kernels ---------------------------------
def _conv_core(rows_f32, wband_ref):
    """rows_f32: (H, W*Cin) f32 un-padded image rows.  Returns the (H, W*Cout) f32 conv."""
    h, wc = rows_f32.shape
    zrow = jnp.zeros((1, wc), jnp.float32)
    # In-register H halo (2 zero rows); bf16 MXU operands, f32 accumulation.
    xp = jnp.concatenate([zrow, rows_f32, zrow], axis=0).astype(jnp.bfloat16)   # (H+2, WC)
    acc = jnp.dot(xp[0:h, :], wband_ref[0], preferred_element_type=jnp.float32)
    acc = acc + jnp.dot(xp[1:h + 1, :], wband_ref[1], preferred_element_type=jnp.float32)
    acc = acc + jnp.dot(xp[2:h + 2, :], wband_ref[2], preferred_element_type=jnp.float32)
    return acc


def _emit(acc, y_ref, ssum_ref, ssq_ref):
    """Lane-dense bf16 store of the conv block + f32 per-lane BN partial statistics."""
    y_ref[0] = acc.astype(y_ref.dtype)
    ssum_ref[0] = jnp.sum(acc, axis=0, keepdims=True)
    ssq_ref[0] = jnp.sum(acc * acc, axis=0, keepdims=True)


def _conv1_kernel(x_ref, wband_ref, y_ref, ssum_ref, ssq_ref):
    """Pass 1: conv1 for one image.  x_ref: (1, H, W*Cin) f32."""
    _emit(_conv_core(x_ref[0], wband_ref), y_ref, ssum_ref, ssq_ref)


def _bn1_relu_conv2_kernel(y1_ref, sc_ref, sh_ref, wband_ref, y_ref, ssum_ref, ssq_ref):
    """Pass 2 (fused): bn1-apply + ReLU + conv2 for one image; out1 never hits HBM."""
    o1 = jnp.maximum(y1_ref[0].astype(jnp.float32) * sc_ref[...] + sh_ref[...], 0.0)
    _emit(_conv_core(o1, wband_ref), y_ref, ssum_ref, ssq_ref)


def _conv_pass(kernel, args, in_specs, n, h, wc_out):
    # TODO(synk): at realistic H (e.g. 56) split into a (N, row-band) grid with per-band
    # stat partials for v7x dual-TC balance; per-image steps are already tiny at H=16.
    return pl.pallas_call(
        kernel,
        out_shape=(jax.ShapeDtypeStruct((n, h, wc_out), jnp.bfloat16),   # bf16 intermediate
                   jax.ShapeDtypeStruct((n, 1, wc_out), jnp.float32),    # per-image sum
                   jax.ShapeDtypeStruct((n, 1, wc_out), jnp.float32)),   # per-image sum-sq
        grid=(n,),
        in_specs=list(in_specs),
        out_specs=(pl.BlockSpec((1, h, wc_out), lambda i: (i, 0, 0)),
                   pl.BlockSpec((1, 1, wc_out), lambda i: (i, 0, 0)),
                   pl.BlockSpec((1, 1, wc_out), lambda i: (i, 0, 0))),
        compiler_params=pltpu.CompilerParams(
            dimension_semantics=("parallel",),
            vmem_limit_bytes=_vmem_limit_bytes()),
    )(*args)


# --------------------------------- Pass 3: bn2 + residual + relu ---------------------------------
def _bn2_add_relu_kernel(y_ref, sc_ref, sh_ref, r_ref, o_ref):
    o_ref[...] = jnp.maximum(
        y_ref[...].astype(jnp.float32) * sc_ref[...] + sh_ref[...] + r_ref[...],
        0.0).astype(o_ref.dtype)


def _row_tile(rows, bytes_per_row, budget_bytes):
    """Largest row tile that (double-buffered) fits the byte budget and divides `rows`."""
    cap = min(budget_bytes // (2 * max(bytes_per_row, 1)), 2048, rows)
    if cap >= rows:
        return rows
    t = max(8, (cap // 8) * 8)
    while t > 8 and rows % t:
        t -= 8
    return t if rows % t == 0 else rows   # TODO(synk): ragged row counts would need masking


def _apply_pass(y_rows, scale_row, shift_row, res_rows):
    rows, lanes = y_rows.shape
    vmem = _vmem_limit_bytes()
    bytes_per_row = lanes * (2 + 4 + 4)            # y bf16 + residual f32 + out f32
    tr = _row_tile(rows, bytes_per_row, (vmem * 3) // 5)
    row_spec = pl.BlockSpec((tr, lanes), lambda i: (i, 0))
    vec_spec = pl.BlockSpec((1, lanes), lambda i: (0, 0))
    return pl.pallas_call(
        _bn2_add_relu_kernel,
        out_shape=jax.ShapeDtypeStruct((rows, lanes), jnp.float32),
        grid=(rows // tr,),
        in_specs=[row_spec, vec_spec, vec_spec, row_spec],
        out_specs=row_spec,
        compiler_params=pltpu.CompilerParams(
            dimension_semantics=("parallel",),
            vmem_limit_bytes=vmem),
    )(y_rows, scale_row, shift_row, res_rows)


# --------------------------------- BN stat fold (tiny, in XLA) ---------------------------------
def _bn_fold(ssum_nl, ssq_nl, gamma, beta, count, w):
    """Fold per-image per-lane partial sums into lane-tiled per-channel scale/shift."""
    cout = gamma.shape[0]
    ssum = jnp.sum(ssum_nl, axis=(0, 1)).reshape(w, cout).sum(axis=0)
    ssq = jnp.sum(ssq_nl, axis=(0, 1)).reshape(w, cout).sum(axis=0)
    mean = ssum / count
    # TODO(synk): E[x^2]-E[x]^2 can cancel at large N*H*W; use a shifted/Welford fold there.
    var = ssq / count - mean * mean                # biased variance (training-mode BN)
    scale = gamma * lax.rsqrt(var + EPS)
    shift = beta - mean * scale
    return (jnp.tile(scale, w)[None, :].astype(jnp.float32),
            jnp.tile(shift, w)[None, :].astype(jnp.float32))


# ------------------------------------------ wrapper ------------------------------------------
@jax.jit
def basic_block_forward(x_nchw, params):
    """ResNet BasicBlock forward (stride=1, no downsample).  x_nchw: (N, C, H, W) f32."""
    w1, g1, b1, w2, g2, b2 = params                # conv weights HWIO (3, 3, Cin, Cout)
    n, c, hh, ww = x_nchw.shape
    c1, c2 = w1.shape[3], w2.shape[3]
    wc_in, wc1, wc2 = ww * c, ww * c1, ww * c2
    count = float(n * hh * ww)

    # TODO(synk): the NCHW<->NHWC transposes disappear if the surrounding model runs NHWC.
    x_nhwc = jnp.transpose(x_nchw, (0, 2, 3, 1)).astype(jnp.float32)
    x_rows = x_nhwc.reshape(n, hh, wc_in)          # lane-dense (rows, W*C) f32 view

    # TODO(synk): for real ResNet widths (W*Cin >> 128) the banded weights over-pad K;
    # switch Pass 1/2 to 9 accumulating K=Cin matmuls on shifted views there.
    wb1 = _make_band_weights(w1, ww)
    wb2 = _make_band_weights(w2, ww)

    # ---- Pass 1: y1 = conv1(x), BN1 partial stats ----
    y1, s1_sum, s1_sq = _conv_pass(
        _conv1_kernel, (x_rows, wb1),
        [pl.BlockSpec((1, hh, wc_in), lambda i: (i, 0, 0)),
         pl.BlockSpec((3, wc_in, wc1), lambda i: (0, 0, 0))],   # weights stay resident
        n, hh, wc1)
    sc1, sh1 = _bn_fold(s1_sum, s1_sq, g1, b1, count, ww)

    # ---- Pass 2 (fused): y2 = conv2(relu(bn1(y1))), BN2 partial stats ----
    y2, s2_sum, s2_sq = _conv_pass(
        _bn1_relu_conv2_kernel, (y1, sc1, sh1, wb2),
        [pl.BlockSpec((1, hh, wc1), lambda i: (i, 0, 0)),
         pl.BlockSpec((1, wc1), lambda i: (0, 0)),
         pl.BlockSpec((1, wc1), lambda i: (0, 0)),
         pl.BlockSpec((3, wc1, wc2), lambda i: (0, 0, 0))],
        n, hh, wc2)
    sc2, sh2 = _bn_fold(s2_sum, s2_sq, g2, b2, count, ww)

    # ---- Pass 3: out = relu(bn2(y2) + x) ----
    out_rows = _apply_pass(y2.reshape(n * hh, wc2), sc2, sh2,
                           x_rows.reshape(n * hh, wc_in))
    return jnp.transpose(out_rows.reshape(n, hh, ww, c2), (0, 3, 1, 2))


# ---------------------------- pure-JAX references for verification ----------------------------
def _ref_forward(x_nchw, params, conv_dtype, round_y=False):
    """conv_dtype=bfloat16 + round_y=True mirrors the kernel's exact precision recipe
    (bf16 MXU operands, f32 stats, bf16-rounded conv intermediates before the BN apply);
    conv_dtype=float32 + round_y=False is the full-f32 PyTorch math."""
    w1, g1, b1, w2, g2, b2 = params
    x = jnp.transpose(x_nchw, (0, 2, 3, 1)).astype(jnp.float32)
    dn = ('NHWC', 'HWIO', 'NHWC')

    def conv(inp, wgt):
        return lax.conv_general_dilated(
            inp.astype(conv_dtype), wgt.astype(conv_dtype), (1, 1), 'SAME',
            dimension_numbers=dn, preferred_element_type=jnp.float32)

    def fold(y, g, b):
        m = jnp.mean(y, axis=(0, 1, 2))
        v = jnp.mean(y * y, axis=(0, 1, 2)) - m * m
        s = g * lax.rsqrt(v + EPS)
        return s, b - m * s

    def maybe_round(y):
        return y.astype(jnp.bfloat16).astype(jnp.float32) if round_y else y

    y1 = conv(x, w1)
    sc1, sh1 = fold(y1, g1, b1)
    o1 = jnp.maximum(maybe_round(y1) * sc1 + sh1, 0.0)
    y2 = conv(o1, w2)
    sc2, sh2 = fold(y2, g2, b2)
    out = jnp.maximum(maybe_round(y2) * sc2 + sh2 + x, 0.0)
    return jnp.transpose(out, (0, 3, 1, 2))


if __name__ == "__main__":
    key = jax.random.PRNGKey(0)
    kx, k1, k2, k3, k4, k5, k6 = jax.random.split(key, 7)

    N, C, H, W = 2, 8, 16, 16            # inplanes = planes = 8, stride = 1 (W*C = 128 lanes)
    x = jax.random.normal(kx, (N, C, H, W), jnp.float32)

    # conv weights stored HWIO (3, 3, Cin, Cout); BN gamma/beta per channel
    w1 = jax.random.normal(k1, (3, 3, C, C), jnp.float32) * 0.1
    w2 = jax.random.normal(k2, (3, 3, C, C), jnp.float32) * 0.1
    g1 = 1.0 + 0.1 * jax.random.normal(k3, (C,), jnp.float32)
    b1 = 0.1 * jax.random.normal(k4, (C,), jnp.float32)
    g2 = 1.0 + 0.1 * jax.random.normal(k5, (C,), jnp.float32)
    b2 = 0.1 * jax.random.normal(k6, (C,), jnp.float32)
    params = (w1, g1, b1, w2, g2, b2)

    out = jax.block_until_ready(basic_block_forward(x, params))
    assert out.shape == (N, C, H, W)

    # Tight check against a reference matching the kernel's precision recipe.
    ref_matched = _ref_forward(x, params, jnp.bfloat16, round_y=True)
    assert jnp.allclose(out, ref_matched, rtol=2e-2, atol=2e-2), "mismatch vs matched ref"
    # Loose sanity check against the full-f32 PyTorch math (bounded bf16 deviation).
    ref_f32 = _ref_forward(x, params, jnp.float32, round_y=False)
    assert jnp.allclose(out, ref_f32, rtol=1e-1, atol=1e-1), "mismatch vs f32 ref"

    print("KERNEL_OK")
</pallas_src>

<mosaic_0001>
module attributes {stable_mosaic.version = 11 : i64} {
  func.func @_conv1_kernel(%arg0: i32, %arg1: memref<1x16x128xf32, #tpu.memory_space<vmem>>, %arg2: memref<3x128x128xbf16, #tpu.memory_space<vmem>>, %arg3: memref<1x16x128xbf16, #tpu.memory_space<vmem>>, %arg4: memref<1x1x128xf32, #tpu.memory_space<vmem>>, %arg5: memref<1x1x128xf32, #tpu.memory_space<vmem>>) attributes {dimension_semantics = [#tpu.dimension_semantics<parallel>], iteration_bounds = array<i64: 2>, scalar_prefetch = 0 : i64, scratch_operands = 0 : i64, tpu.core_type = #tpu.core_type<tc>, window_params = [{transform_indices = @transform_0, window_bounds = array<i64: 1, 16, 128>}, {pipeline_mode = #tpu.pipeline_mode<synchronous>, transform_indices = @transform_1, window_bounds = array<i64: 3, 128, 128>}, {transform_indices = @transform_2, window_bounds = array<i64: 1, 16, 128>}, {transform_indices = @transform_3, window_bounds = array<i64: 1, 1, 128>}, {transform_indices = @transform_4, window_bounds = array<i64: 1, 1, 128>}]} {
    %c0 = arith.constant 0 : index
    %c0_0 = arith.constant 0 : index
    %c0_1 = arith.constant 0 : index
    %0 = vector.load %arg1[%c0, %c0_0, %c0_1] : memref<1x16x128xf32, #tpu.memory_space<vmem>>, vector<1x16x128xf32>
    %1 = vector.shape_cast %0 : vector<1x16x128xf32> to vector<16x128xf32>
    %cst = arith.constant 0.000000e+00 : f32
    %2 = vector.broadcast %cst : f32 to vector<1x128xf32>
    %3 = tpu.concatenate %2, %1, %2 in 0 : vector<1x128xf32>, vector<16x128xf32>, vector<1x128xf32> -> vector<18x128xf32>
    %4 = arith.truncf %3 : vector<18x128xf32> to vector<18x128xbf16>
    %5 = vector.extract_strided_slice %4 {offsets = [0, 0], sizes = [16, 128], strides = [1, 1]} : vector<18x128xbf16> to vector<16x128xbf16>
    %c0_2 = arith.constant 0 : index
    %c0_3 = arith.constant 0 : index
    %c0_4 = arith.constant 0 : index
    %6 = vector.load %arg2[%c0_2, %c0_3, %c0_4] : memref<3x128x128xbf16, #tpu.memory_space<vmem>>, vector<1x128x128xbf16>
    %7 = vector.shape_cast %6 : vector<1x128x128xbf16> to vector<128x128xbf16>
    %cst_5 = arith.constant dense<0.000000e+00> : vector<16x128xf32>
    %8 = tpu.matmul %5, %7, %cst_5 {dimension_numbers = #tpu.dot_dimension_numbers<[1], [0], [0], [1], [0, 0, 1, 1], [], []>} : vector<16x128xbf16>, vector<128x128xbf16>, vector<16x128xf32> -> vector<16x128xf32>
    %9 = vector.extract_strided_slice %4 {offsets = [1, 0], sizes = [16, 128], strides = [1, 1]} : vector<18x128xbf16> to vector<16x128xbf16>
    %c1 = arith.constant 1 : index
    %c0_6 = arith.constant 0 : index
    %c0_7 = arith.constant 0 : index
    %10 = vector.load %arg2[%c1, %c0_6, %c0_7] : memref<3x128x128xbf16, #tpu.memory_space<vmem>>, vector<1x128x128xbf16>
    %11 = vector.shape_cast %10 : vector<1x128x128xbf16> to vector<128x128xbf16>
    %cst_8 = arith.constant dense<0.000000e+00> : vector<16x128xf32>
    %12 = tpu.matmul %9, %11, %cst_8 {dimension_numbers = #tpu.dot_dimension_numbers<[1], [0], [0], [1], [0, 0, 1, 1], [], []>} : vector<16x128xbf16>, vector<128x128xbf16>, vector<16x128xf32> -> vector<16x128xf32>
    %13 = arith.addf %8, %12 : vector<16x128xf32>
    %14 = vector.extract_strided_slice %4 {offsets = [2, 0], sizes = [16, 128], strides = [1, 1]} : vector<18x128xbf16> to vector<16x128xbf16>
    %c2 = arith.constant 2 : index
    %c0_9 = arith.constant 0 : index
    %c0_10 = arith.constant 0 : index
    %15 = vector.load %arg2[%c2, %c0_9, %c0_10] : memref<3x128x128xbf16, #tpu.memory_space<vmem>>, vector<1x128x128xbf16>
    %16 = vector.shape_cast %15 : vector<1x128x128xbf16> to vector<128x128xbf16>
    %cst_11 = arith.constant dense<0.000000e+00> : vector<16x128xf32>
    %17 = tpu.matmul %14, %16, %cst_11 {dimension_numbers = #tpu.dot_dimension_numbers<[1], [0], [0], [1], [0, 0, 1, 1], [], []>} : vector<16x128xbf16>, vector<128x128xbf16>, vector<16x128xf32> -> vector<16x128xf32>
    %18 = arith.addf %13, %17 : vector<16x128xf32>
    %19 = arith.truncf %18 : vector<16x128xf32> to vector<16x128xbf16>
    %c0_12 = arith.constant 0 : index
    %c0_13 = arith.constant 0 : index
    %c0_14 = arith.constant 0 : index
    %20 = vector.load %arg3[%c0_12, %c0_13, %c0_14] : memref<1x16x128xbf16, #tpu.memory_space<vmem>>, vector<1x16x128xbf16>
    %21 = vector.shape_cast %20 : vector<1x16x128xbf16> to vector<16x128xbf16>
    %22 = vector.shape_cast %19 : vector<16x128xbf16> to vector<1x16x128xbf16>
    tpu.vector_store %arg3[%c0_12, %c0_13, %c0_14], %22 {strides = array<i32>} : memref<1x16x128xbf16, #tpu.memory_space<vmem>>, vector<1x16x128xbf16>,
    %cst_15 = arith.constant dense<0.000000e+00> : vector<128xf32>
    %23 = vector.multi_reduction <add>, %18, %cst_15 [0] : vector<16x128xf32> to vector<128xf32>
    %24 = vector.shape_cast %23 : vector<128xf32> to vector<1x128xf32>
    %c0_16 = arith.constant 0 : index
    %c0_17 = arith.constant 0 : index
    %c0_18 = arith.constant 0 : index
    %25 = vector.load %arg4[%c0_16, %c0_17, %c0_18] : memref<1x1x128xf32, #tpu.memory_space<vmem>>, vector<1x1x128xf32>
    %26 = vector.shape_cast %25 : vector<1x1x128xf32> to vector<1x128xf32>
    %27 = vector.shape_cast %24 : vector<1x128xf32> to vector<1x1x128xf32>
    tpu.vector_store %arg4[%c0_16, %c0_17, %c0_18], %27 {strides = array<i32>} : memref<1x1x128xf32, #tpu.memory_space<vmem>>, vector<1x1x128xf32>,
    %28 = arith.mulf %18, %18 : vector<16x128xf32>
    %cst_19 = arith.constant dense<0.000000e+00> : vector<128xf32>
    %29 = vector.multi_reduction <add>, %28, %cst_19 [0] : vector<16x128xf32> to vector<128xf32>
    %30 = vector.shape_cast %29 : vector<128xf32> to vector<1x128xf32>
    %c0_20 = arith.constant 0 : index
    %c0_21 = arith.constant 0 : index
    %c0_22 = arith.constant 0 : index
    %31 = vector.load %arg5[%c0_20, %c0_21, %c0_22] : memref<1x1x128xf32, #tpu.memory_space<vmem>>, vector<1x1x128xf32>
    %32 = vector.shape_cast %31 : vector<1x1x128xf32> to vector<1x128xf32>
    %33 = vector.shape_cast %30 : vector<1x128xf32> to vector<1x1x128xf32>
    tpu.vector_store %arg5[%c0_20, %c0_21, %c0_22], %33 {strides = array<i32>} : memref<1x1x128xf32, #tpu.memory_space<vmem>>, vector<1x1x128xf32>,
    return
  }
  func.func @transform_0(%arg0: i32) -> (i32, i32, i32) {
    %c0_i32 = arith.constant 0 : i32
    %c0_i32_0 = arith.constant 0 : i32
    %c0_i32_1 = arith.constant 0 : i32
    return %arg0, %c0_i32, %c0_i32_0 : i32, i32, i32
  }
  func.func @transform_1(%arg0: i32) -> (i32, i32, i32) {
    %c0_i32 = arith.constant 0 : i32
    %c0_i32_0 = arith.constant 0 : i32
    %c0_i32_1 = arith.constant 0 : i32
    %c0_i32_2 = arith.constant 0 : i32
    return %c0_i32, %c0_i32_0, %c0_i32_1 : i32, i32, i32
  }
  func.func @transform_2(%arg0: i32) -> (i32, i32, i32) {
    %c0_i32 = arith.constant 0 : i32
    %c0_i32_0 = arith.constant 0 : i32
    %c0_i32_1 = arith.constant 0 : i32
    return %arg0, %c0_i32, %c0_i32_0 : i32, i32, i32
  }
  func.func @transform_3(%arg0: i32) -> (i32, i32, i32) {
    %c0_i32 = arith.constant 0 : i32
    %c0_i32_0 = arith.constant 0 : i32
    %c0_i32_1 = arith.constant 0 : i32
    return %arg0, %c0_i32, %c0_i32_0 : i32, i32, i32
  }
  func.func @transform_4(%arg0: i32) -> (i32, i32, i32) {
    %c0_i32 = arith.constant 0 : i32
    %c0_i32_0 = arith.constant 0 : i32
    %c0_i32_1 = arith.constant 0 : i32
    return %arg0, %c0_i32, %c0_i32_0 : i32, i32, i32
  }
}

module attributes {stable_mosaic.version = 11 : i64} {
  func.func @_bn1_relu_conv2_kernel(%arg0: i32, %arg1: memref<1x16x128xbf16, #tpu.memory_space<vmem>>, %arg2: memref<1x128xf32, #tpu.memory_space<vmem>>, %arg3: memref<1x128xf32, #tpu.memory_space<vmem>>, %arg4: memref<3x128x128xbf16, #tpu.memory_space<vmem>>, %arg5: memref<1x16x128xbf16, #tpu.memory_space<vmem>>, %arg6: memref<1x1x128xf32, #tpu.memory_space<vmem>>, %arg7: memref<1x1x128xf32, #tpu.memory_space<vmem>>) attributes {dimension_semantics = [#tpu.dimension_semantics<parallel>], iteration_bounds = array<i64: 2>, scalar_prefetch = 0 : i64, scratch_operands = 0 : i64, tpu.core_type = #tpu.core_type<tc>, window_params = [{transform_indices = @transform_0, window_bounds = array<i64: 1, 16, 128>}, {pipeline_mode = #tpu.pipeline_mode<synchronous>, transform_indices = @transform_1, window_bounds = array<i64: 1, 128>}, {pipeline_mode = #tpu.pipeline_mode<synchronous>, transform_indices = @transform_2, window_bounds = array<i64: 1, 128>}, {pipeline_mode = #tpu.pipeline_mode<synchronous>, transform_indices = @transform_3, window_bounds = array<i64: 3, 128, 128>}, {transform_indices = @transform_4, window_bounds = array<i64: 1, 16, 128>}, {transform_indices = @transform_5, window_bounds = array<i64: 1, 1, 128>}, {transform_indices = @transform_6, window_bounds = array<i64: 1, 1, 128>}]} {
    %c0 = arith.constant 0 : index
    %c0_0 = arith.constant 0 : index
    %c0_1 = arith.constant 0 : index
    %0 = vector.load %arg1[%c0, %c0_0, %c0_1] : memref<1x16x128xbf16, #tpu.memory_space<vmem>>, vector<1x16x128xbf16>
    %1 = vector.shape_cast %0 : vector<1x16x128xbf16> to vector<16x128xbf16>
    %2 = arith.extf %1 : vector<16x128xbf16> to vector<16x128xf32>
    %c0_2 = arith.constant 0 : index
    %c0_3 = arith.constant 0 : index
    %3 = vector.load %arg2[%c0_2, %c0_3] : memref<1x128xf32, #tpu.memory_space<vmem>>, vector<1x128xf32>
    %4 = vector.broadcast %3 : vector<1x128xf32> to vector<16x128xf32>
    %5 = arith.mulf %2, %4 : vector<16x128xf32>
    %c0_4 = arith.constant 0 : index
    %c0_5 = arith.constant 0 : index
    %6 = vector.load %arg3[%c0_4, %c0_5] : memref<1x128xf32, #tpu.memory_space<vmem>>, vector<1x128xf32>
    %7 = vector.broadcast %6 : vector<1x128xf32> to vector<16x128xf32>
    %8 = arith.addf %5, %7 : vector<16x128xf32>
    %cst = arith.constant 0.000000e+00 : f32
    %9 = vector.broadcast %cst : f32 to vector<16x128xf32>
    %10 = arith.maximumf %8, %9 : vector<16x128xf32>
    %cst_6 = arith.constant 0.000000e+00 : f32
    %11 = vector.broadcast %cst_6 : f32 to vector<1x128xf32>
    %12 = tpu.concatenate %11, %10, %11 in 0 : vector<1x128xf32>, vector<16x128xf32>, vector<1x128xf32> -> vector<18x128xf32>
    %13 = arith.truncf %12 : vector<18x128xf32> to vector<18x128xbf16>
    %14 = vector.extract_strided_slice %13 {offsets = [0, 0], sizes = [16, 128], strides = [1, 1]} : vector<18x128xbf16> to vector<16x128xbf16>
    %c0_7 = arith.constant 0 : index
    %c0_8 = arith.constant 0 : index
    %c0_9 = arith.constant 0 : index
    %15 = vector.load %arg4[%c0_7, %c0_8, %c0_9] : memref<3x128x128xbf16, #tpu.memory_space<vmem>>, vector<1x128x128xbf16>
    %16 = vector.shape_cast %15 : vector<1x128x128xbf16> to vector<128x128xbf16>
    %cst_10 = arith.constant dense<0.000000e+00> : vector<16x128xf32>
    %17 = tpu.matmul %14, %16, %cst_10 {dimension_numbers = #tpu.dot_dimension_numbers<[1], [0], [0], [1], [0, 0, 1, 1], [], []>} : vector<16x128xbf16>, vector<128x128xbf16>, vector<16x128xf32> -> vector<16x128xf32>
    %18 = vector.extract_strided_slice %13 {offsets = [1, 0], sizes = [16, 128], strides = [1, 1]} : vector<18x128xbf16> to vector<16x128xbf16>
    %c1 = arith.constant 1 : index
    %c0_11 = arith.constant 0 : index
    %c0_12 = arith.constant 0 : index
    %19 = vector.load %arg4[%c1, %c0_11, %c0_12] : memref<3x128x128xbf16, #tpu.memory_space<vmem>>, vector<1x128x128xbf16>
    %20 = vector.shape_cast %19 : vector<1x128x128xbf16> to vector<128x128xbf16>
    %cst_13 = arith.constant dense<0.000000e+00> : vector<16x128xf32>
    %21 = tpu.matmul %18, %20, %cst_13 {dimension_numbers = #tpu.dot_dimension_numbers<[1], [0], [0], [1], [0, 0, 1, 1], [], []>} : vector<16x128xbf16>, vector<128x128xbf16>, vector<16x128xf32> -> vector<16x128xf32>
    %22 = arith.addf %17, %21 : vector<16x128xf32>
    %23 = vector.extract_strided_slice %13 {offsets = [2, 0], sizes = [16, 128], strides = [1, 1]} : vector<18x128xbf16> to vector<16x128xbf16>
    %c2 = arith.constant 2 : index
    %c0_14 = arith.constant 0 : index
    %c0_15 = arith.constant 0 : index
    %24 = vector.load %arg4[%c2, %c0_14, %c0_15] : memref<3x128x128xbf16, #tpu.memory_space<vmem>>, vector<1x128x128xbf16>
    %25 = vector.shape_cast %24 : vector<1x128x128xbf16> to vector<128x128xbf16>
    %cst_16 = arith.constant dense<0.000000e+00> : vector<16x128xf32>
    %26 = tpu.matmul %23, %25, %cst_16 {dimension_numbers = #tpu.dot_dimension_numbers<[1], [0], [0], [1], [0, 0, 1, 1], [], []>} : vector<16x128xbf16>, vector<128x128xbf16>, vector<16x128xf32> -> vector<16x128xf32>
    %27 = arith.addf %22, %26 : vector<16x128xf32>
    %28 = arith.truncf %27 : vector<16x128xf32> to vector<16x128xbf16>
    %c0_17 = arith.constant 0 : index
    %c0_18 = arith.constant 0 : index
    %c0_19 = arith.constant 0 : index
    %29 = vector.load %arg5[%c0_17, %c0_18, %c0_19] : memref<1x16x128xbf16, #tpu.memory_space<vmem>>, vector<1x16x128xbf16>
    %30 = vector.shape_cast %29 : vector<1x16x128xbf16> to vector<16x128xbf16>
    %31 = vector.shape_cast %28 : vector<16x128xbf16> to vector<1x16x128xbf16>
    tpu.vector_store %arg5[%c0_17, %c0_18, %c0_19], %31 {strides = array<i32>} : memref<1x16x128xbf16, #tpu.memory_space<vmem>>, vector<1x16x128xbf16>,
    %cst_20 = arith.constant dense<0.000000e+00> : vector<128xf32>
    %32 = vector.multi_reduction <add>, %27, %cst_20 [0] : vector<16x128xf32> to vector<128xf32>
    %33 = vector.shape_cast %32 : vector<128xf32> to vector<1x128xf32>
    %c0_21 = arith.constant 0 : index
    %c0_22 = arith.constant 0 : index
    %c0_23 = arith.constant 0 : index
    %34 = vector.load %arg6[%c0_21, %c0_22, %c0_23] : memref<1x1x128xf32, #tpu.memory_space<vmem>>, vector<1x1x128xf32>
    %35 = vector.shape_cast %34 : vector<1x1x128xf32> to vector<1x128xf32>
    %36 = vector.shape_cast %33 : vector<1x128xf32> to vector<1x1x128xf32>
    tpu.vector_store %arg6[%c0_21, %c0_22, %c0_23], %36 {strides = array<i32>} : memref<1x1x128xf32, #tpu.memory_space<vmem>>, vector<1x1x128xf32>,
    %37 = arith.mulf %27, %27 : vector<16x128xf32>
    %cst_24 = arith.constant dense<0.000000e+00> : vector<128xf32>
    %38 = vector.multi_reduction <add>, %37, %cst_24 [0] : vector<16x128xf32> to vector<128xf32>
    %39 = vector.shape_cast %38 : vector<128xf32> to vector<1x128xf32>
    %c0_25 = arith.constant 0 : index
    %c0_26 = arith.constant 0 : index
    %c0_27 = arith.constant 0 : index
    %40 = vector.load %arg7[%c0_25, %c0_26, %c0_27] : memref<1x1x128xf32, #tpu.memory_space<vmem>>, vector<1x1x128xf32>
    %41 = vector.shape_cast %40 : vector<1x1x128xf32> to vector<1x128xf32>
    %42 = vector.shape_cast %39 : vector<1x128xf32> to vector<1x1x128xf32>
    tpu.vector_store %arg7[%c0_25, %c0_26, %c0_27], %42 {strides = array<i32>} : memref<1x1x128xf32, #tpu.memory_space<vmem>>, vector<1x1x128xf32>,
    return
  }
  func.func @transform_0(%arg0: i32) -> (i32, i32, i32) {
    %c0_i32 = arith.constant 0 : i32
    %c0_i32_0 = arith.constant 0 : i32
    %c0_i32_1 = arith.constant 0 : i32
    return %arg0, %c0_i32, %c0_i32_0 : i32, i32, i32
  }
  func.func @transform_1(%arg0: i32) -> (i32, i32) {
    %c0_i32 = arith.constant 0 : i32
    %c0_i32_0 = arith.constant 0 : i32
    %c0_i32_1 = arith.constant 0 : i32
    return %c0_i32, %c0_i32_0 : i32, i32
  }
  func.func @transform_2(%arg0: i32) -> (i32, i32) {
    %c0_i32 = arith.constant 0 : i32
    %c0_i32_0 = arith.constant 0 : i32
    %c0_i32_1 = arith.constant 0 : i32
    return %c0_i32, %c0_i32_0 : i32, i32
  }
  func.func @transform_3(%arg0: i32) -> (i32, i32, i32) {
    %c0_i32 = arith.constant 0 : i32
    %c0_i32_0 = arith.constant 0 : i32
    %c0_i32_1 = arith.constant 0 : i32
    %c0_i32_2 = arith.constant 0 : i32
    return %c0_i32, %c0_i32_0, %c0_i32_1 : i32, i32, i32
  }
  func.func @transform_4(%arg0: i32) -> (i32, i32, i32) {
    %c0_i32 = arith.constant 0 : i32
    %c0_i32_0 = arith.constant 0 : i32
    %c0_i32_1 = arith.constant 0 : i32
    return %arg0, %c0_i32, %c0_i32_0 : i32, i32, i32
  }
  func.func @transform_5(%arg0: i32) -> (i32, i32, i32) {
    %c0_i32 = arith.constant 0 : i32
    %c0_i32_0 = arith.constant 0 : i32
    %c0_i32_1 = arith.constant 0 : i32
    return %arg0, %c0_i32, %c0_i32_0 : i32, i32, i32
  }
  func.func @transform_6(%arg0: i32) -> (i32, i32, i32) {
    %c0_i32 = arith.constant 0 : i32
    %c0_i32_0 = arith.constant 0 : i32
    %c0_i32_1 = arith.constant 0 : i32
    return %arg0, %c0_i32, %c0_i32_0 : i32, i32, i32
  }
}

module attributes {stable_mosaic.version = 11 : i64} {
  func.func @_bn2_add_relu_kernel(%arg0: i32, %arg1: memref<32x128xbf16, #tpu.memory_space<vmem>>, %arg2: memref<1x128xf32, #tpu.memory_space<vmem>>, %arg3: memref<1x128xf32, #tpu.memory_space<vmem>>, %arg4: memref<32x128xf32, #tpu.memory_space<vmem>>, %arg5: memref<32x128xf32, #tpu.memory_space<vmem>>) attributes {dimension_semantics = [#tpu.dimension_semantics<parallel>], iteration_bounds = array<i64: 1>, scalar_prefetch = 0 : i64, scratch_operands = 0 : i64, tpu.core_type = #tpu.core_type<tc>, window_params = [{transform_indices = @transform_0, window_bounds = array<i64: 32, 128>}, {pipeline_mode = #tpu.pipeline_mode<synchronous>, transform_indices = @transform_1, window_bounds = array<i64: 1, 128>}, {pipeline_mode = #tpu.pipeline_mode<synchronous>, transform_indices = @transform_2, window_bounds = array<i64: 1, 128>}, {transform_indices = @transform_3, window_bounds = array<i64: 32, 128>}, {transform_indices = @transform_4, window_bounds = array<i64: 32, 128>}]} {
    %c0 = arith.constant 0 : index
    %c0_0 = arith.constant 0 : index
    %0 = vector.load %arg1[%c0, %c0_0] : memref<32x128xbf16, #tpu.memory_space<vmem>>, vector<32x128xbf16>
    %1 = arith.extf %0 : vector<32x128xbf16> to vector<32x128xf32>
    %c0_1 = arith.constant 0 : index
    %c0_2 = arith.constant 0 : index
    %2 = vector.load %arg2[%c0_1, %c0_2] : memref<1x128xf32, #tpu.memory_space<vmem>>, vector<1x128xf32>
    %3 = vector.broadcast %2 : vector<1x128xf32> to vector<32x128xf32>
    %4 = arith.mulf %1, %3 : vector<32x128xf32>
    %c0_3 = arith.constant 0 : index
    %c0_4 = arith.constant 0 : index
    %5 = vector.load %arg3[%c0_3, %c0_4] : memref<1x128xf32, #tpu.memory_space<vmem>>, vector<1x128xf32>
    %6 = vector.broadcast %5 : vector<1x128xf32> to vector<32x128xf32>
    %7 = arith.addf %4, %6 : vector<32x128xf32>
    %c0_5 = arith.constant 0 : index
    %c0_6 = arith.constant 0 : index
    %8 = vector.load %arg4[%c0_5, %c0_6] : memref<32x128xf32, #tpu.memory_space<vmem>>, vector<32x128xf32>
    %9 = arith.addf %7, %8 : vector<32x128xf32>
    %cst = arith.constant 0.000000e+00 : f32
    %10 = vector.broadcast %cst : f32 to vector<32x128xf32>
    %11 = arith.maximumf %9, %10 : vector<32x128xf32>
    %c0_7 = arith.constant 0 : index
    %c0_8 = arith.constant 0 : index
    %12 = vector.load %arg5[%c0_7, %c0_8] : memref<32x128xf32, #tpu.memory_space<vmem>>, vector<32x128xf32>
    tpu.vector_store %arg5[%c0_7, %c0_8], %11 {strides = array<i32>} : memref<32x128xf32, #tpu.memory_space<vmem>>, vector<32x128xf32>,
    return
  }
  func.func @transform_0(%arg0: i32) -> (i32, i32) {
    %c0_i32 = arith.constant 0 : i32
    %c0_i32_0 = arith.constant 0 : i32
    return %arg0, %c0_i32 : i32, i32
  }
  func.func @transform_1(%arg0: i32) -> (i32, i32) {
    %c0_i32 = arith.constant 0 : i32
    %c0_i32_0 = arith.constant 0 : i32
    %c0_i32_1 = arith.constant 0 : i32
    return %c0_i32, %c0_i32_0 : i32, i32
  }
  func.func @transform_2(%arg0: i32) -> (i32, i32) {
    %c0_i32 = arith.constant 0 : i32
    %c0_i32_0 = arith.constant 0 : i32
    %c0_i32_1 = arith.constant 0 : i32
    return %c0_i32, %c0_i32_0 : i32, i32
  }
  func.func @transform_3(%arg0: i32) -> (i32, i32) {
    %c0_i32 = arith.constant 0 : i32
    %c0_i32_0 = arith.constant 0 : i32
    return %arg0, %c0_i32 : i32, i32
  }
  func.func @transform_4(%arg0: i32) -> (i32, i32) {
    %c0_i32 = arith.constant 0 : i32
    %c0_i32_0 = arith.constant 0 : i32
    return %arg0, %c0_i32 : i32, i32
  }
}

</mosaic_0001>

<bundles_post_ra>
// kernel: basic_block_forward.3
= control target key start
LH: loop header
LB: loop body
LE: loop exit
PB: predicated region body
PF: predicated region fallthrough
CT: control target
= control target key end

     0   :  { %s944_s15 = smov 0   ;;  %s1079_s0 = inlined_call_operand.vmem [shape: f32[2,16,128], index: 0, kind: input, shape index: {}]   ;;  %s1080_s1 = inlined_call_operand.vmem [shape: bf16[3,128,128], index: 1, kind: input, shape index: {}]   ;;  %s1081_s2 = inlined_call_operand.vmem [shape: bf16[2,16,128], index: 2, kind: output, shape index: {0}]   ;;  %s1082_s3 = inlined_call_operand.vmem [shape: f32[2,1,128], index: 3, kind: output, shape index: {1}]   ;;  %s1083_s4 = inlined_call_operand.vmem [shape: f32[2,1,128], index: 4, kind: output, shape index: {2}]  }
   0x1 LB: > { %s704_s16 = sadd.s32 4294967295, %s914_s15   ;;  %p708_p0 = scmp.ge.s32.totalorder %s914_s15, 1  ;;  %s914_s15 = sphi %s944_s15, %s15_s15  }
   0x2   : > { %p167_p1 = scmp.lt.s32.totalorder %s914_s15, 3 }
   0x4   : > { %p168_p2 = pnand %p708_p0, %p167_p1 }
   0x5   : > { %p199_p3 = scmp.lt.s32.totalorder (!%p168_p2), %s704_s16, 1 }
   0x6   : > { %171 = sbr.rel (%p168_p2) target bundleno = 292 (0x124), region = 28 }
   0xb   : > { %v884_v0 = vld [vmem:[%s1080_s1 + $0x78] sm:$0xff]   ;;  %v916_v1 = vmov 0.0   ;;  %v886_v3 = vld [vmem:[%s1080_s1 + $0x70] sm:$0xff]   ;;  %vm917_vm0 = vmmov 0   ;;  %v888_v5 = vld [vmem:[%s1080_s1 + $0x68] sm:$0xff]   ;;  %s1085_s16 = smov (!%p199_p3, %s704_s16), 1 }
   0xc   : > { %813 = vmatprep.subr.bf16.mxu0 %v916_v1  ;;  %833 = vmatprep.subr.bf16.mxu1 %v916_v1  ;;  %v885_v2 = vld [vmem:[%s1080_s1 + $0x38] sm:$0xff]   ;;  %v887_v4 = vld [vmem:[%s1080_s1 + $0x30] sm:$0xff]   ;;  %v889_v6 = vld [vmem:[%s1080_s1 + $0x28] sm:$0xff]   ;;  %s777_s5 = sshll.u32 %s1085_s16, 4  ;;  %vm220_vm1 = vcmask 1040384   ;;  %vm918_vm4 = vmmov 1   ;;  %s211_s27 = scalar_lea.vmem %s1082_s3, %s1085_s16 }
   0xd   : > { %814 = vmatpush3.bf16.msra.mxu0 %v884_v0  ;;  %829 = vmatprep.mubr.msk.bf16.mxu0 %vm917_vm0, %v916_v1  ;;  %v890_v7 = vld [vmem:[%s1080_s1 + $0x60] sm:$0xff]   ;;  %s203_s10 = scalar_lea.vmem %s1079_s0, %s777_s5  ;;  %v892_v9 = vld [vmem:[%s1080_s1 + $0x58] sm:$0xff]   ;;  %v894_v15 = vld [vmem:[%s1080_s1 + $0x50] sm:$0xff]   ;;  %vm264_vm2 = vsmask.f32 7424  ;;  %vm475_vm6 = vcmask 1046528   ;;  %s214_s30 = scalar_lea.vmem %s1083_s4, %s1085_s16 }
   0xe   : > { %834 = vmatpush3.bf16.msra.mxu1 %v885_v2  ;;  %815 = vmatprep.subr.bf16.mxu0 %v916_v1  ;;  %v891_v8 = vld [vmem:[%s1080_s1 + $0x20] sm:$0xff]   ;;  %v893_v10 = vld [vmem:[%s1080_s1 + $0x18] sm:$0xff]   ;;  %v217_v12 = vld [vmem:[%s203_s10 + $0x8] sm:$0xff]  ;;  %s778_s21 = sshll.u32 %s1085_s16, 3 }
   0xf   : > { %835 = vmatprep.subr.bf16.mxu1 %v916_v1  ;;  %849 = vmatprep.mubr.msk.bf16.mxu1 %vm917_vm0, %v916_v1  ;;  %v216_v11 = vld [vmem:[%s203_s10] sm:$0xff]  ;;  %v222_v14 = vrot.slane %v217_v12, 7  ;;  %v895_v16 = vld [vmem:[%s1080_s1 + $0x10] sm:$0xff]   ;;  %v896_v22 = vld [vmem:[%s1080_s1 + $0x48] sm:$0xff]   ;;  %s208_s24 = scalar_lea.vmem %s1081_s2, %s778_s21 }
  0x10   : > { %v221_v13 = vrot.slane %v216_v11, 7  ;;  %v897_v26 = vld [vmem:[%s1080_s1 + $0x8] sm:$0xff]   ;;  %v898_v28 = vld [vmem:[%s1080_s1 + $0x40] sm:$0xff]   ;;  %vm745_vm3 = vmneg %vm220_vm1 }
  0x11   : > { %816 = vmatpush3.bf16.msra.mxu0 %v886_v3  ;;  %v228_v19 = vsel %vm220_vm1, %v222_v14, 0.0  ;;  %v899_v31 = vld [vmem:[%s1080_s1] sm:$0xff]   ;;  %v900_v34 = vld [vmem:[%s1080_s1 + $0xb8] sm:$0xff]   ;;  %vm746_vm5 = vmpackc.low %vm918_vm4, %vm745_vm3 }
  0x12   : > { %836 = vmatpush3.bf16.msra.mxu1 %v887_v4  ;;  %817 = vmatprep.subr.bf16.mxu0 %v916_v1  ;;  %v223_v17 = vsel %vm220_vm1, %v221_v13, %v222_v14  ;;  %v227_v18 = vsel %vm220_vm1, 0.0, %v221_v13  ;;  %v230_v21 = vpack.c.bf16 %v228_v19, %v228_v19  ;;  %v901_v35 = vld [vmem:[%s1080_s1 + $0xb0] sm:$0xff]   ;;  %v902_v36 = vld [vmem:[%s1080_s1 + $0xa8] sm:$0xff]   ;;  %v903_v37 = vld [vmem:[%s1080_s1 + $0xa0] sm:$0xff]  }
  0x13   : > { %837 = vmatprep.subr.bf16.mxu1 %v916_v1  ;;  %v229_v20 = vpack.c.bf16 %v223_v17, %v227_v18  ;;  %v747_v33 = vpack.c.bf16 %v223_v17, %v221_v13  ;;  %v904_v38 = vld [vmem:[%s1080_s1 + $0x98] sm:$0xff]   ;;  %v905_v39 = vld [vmem:[%s1080_s1 + $0x90] sm:$0xff]   ;;  %v906_v40 = vld [vmem:[%s1080_s1 + $0x88] sm:$0xff]  }
  0x14   : > { %v273_v25 = vshll.u32 %v230_v21, 16  ;;  %v907_v41 = vld [vmem:[%s1080_s1 + $0x80] sm:$0xff]   ;;  %v477_v43 = vrot.slane %v230_v21, 1 }
  0x15   : > { %818 = vmatpush3.bf16.msra.mxu0 %v888_v5  ;;  %v266_v23 = vshrl.u32 %v229_v20, 16  ;;  %v268_v24 = vshll.u32 %v229_v20, 16  ;;  %v476_v42 = vrot.slane %v229_v20, 1 }
  0x16   : > { %838 = vmatpush3.bf16.msra.mxu1 %v889_v6  ;;  %819 = vmatprep.subr.bf16.mxu0 %v916_v1  ;;  %v275_v30 = vrot.slane %v273_v25, 1 }
  0x17   : > { %839 = vmatprep.subr.bf16.mxu1 %v916_v1  ;;  %v270_v27 = vrot.slane %v268_v24, 1  ;;  %v478_v44 = vsel %vm475_vm6, %v476_v42, %v477_v43 }
  0x19   : > { %820 = vmatpush3.bf16.msra.mxu0 %v890_v7  ;;  %v271_v29 = vor.u32 %v270_v27, %v266_v23 }
  0x1a   : > { %840 = vmatpush3.bf16.msra.mxu1 %v891_v8  ;;  %821 = vmatprep.subr.bf16.mxu0 %v916_v1 }
  0x1b   : > { %841 = vmatprep.subr.bf16.mxu1 %v916_v1  ;;  %v276_v32 = vsel %vm264_vm2, %v271_v29, %v275_v30 }
  0x1d   : > { %822 = vmatpush3.bf16.msra.mxu0 %v892_v9 }
  0x1e   : > { %842 = vmatpush3.bf16.msra.mxu1 %v893_v10  ;;  %823 = vmatprep.subr.bf16.mxu0 %v916_v1 }
  0x1f   : > { %843 = vmatprep.subr.bf16.mxu1 %v916_v1 }
  0x21   : > { %824 = vmatpush3.bf16.msra.mxu0 %v894_v15 }
  0x22   : > { %844 = vmatpush3.bf16.msra.mxu1 %v895_v16  ;;  %825 = vmatprep.subr.bf16.mxu0 %v916_v1 }
  0x23   : > { %845 = vmatprep.subr.bf16.mxu1 %v916_v1 }
  0x25   : > { %826 = vmatpush3.bf16.msra.mxu0 %v896_v22 }
  0x26   : > { %846 = vmatpush3.bf16.msra.mxu1 %v897_v26  ;;  %827 = vmatprep.subr.bf16.mxu0 %v916_v1 }
  0x27   : > { %847 = vmatprep.subr.bf16.mxu1 %v916_v1 }
  0x29   : > { %828 = vmatpush3.bf16.msra.mxu0 %v898_v28 }
  0x2a   : > { %848 = vmatpush3.bf16.msra.mxu1 %v899_v31  ;;  %853 = vmatprep.subr.bf16.mxu0 %v916_v1 }
  0x2c   : > { %830 = vmatmul.mubr.bf16.vlgmr.msra.gmra.mxu0 %v276_v32 }
  0x2d   : > { %850 = vmatmul.mubr.msk.bf16.vlgmr.msra.gmra.mxu1 %vm746_vm5, %v747_v33  ;;  %854 = vmatpush3.bf16.msra.mxu0 %v900_v34 }
  0x2e   : > { %855 = vmatprep.subr.bf16.mxu0 %v916_v1  ;;  %869 = vmatprep.mubr.msk.bf16.mxu0 %vm917_vm0, %v916_v1 }
  0x31   : > { %856 = vmatpush3.bf16.msra.mxu0 %v901_v35 }
  0x32   : > { %857 = vmatprep.subr.bf16.mxu0 %v916_v1 }
  0x35   : > { %858 = vmatpush3.bf16.msra.mxu0 %v902_v36 }
  0x36   : > { %859 = vmatprep.subr.bf16.mxu0 %v916_v1 }
  0x39   : > { %860 = vmatpush3.bf16.msra.mxu0 %v903_v37 }
  0x3a   : > { %861 = vmatprep.subr.bf16.mxu0 %v916_v1 }
  0x3d   : > { %862 = vmatpush3.bf16.msra.mxu0 %v904_v38 }
  0x3e   : > { %863 = vmatprep.subr.bf16.mxu0 %v916_v1 }
  0x41   : > { %864 = vmatpush3.bf16.msra.mxu0 %v905_v39 }
  0x42   : > { %865 = vmatprep.subr.bf16.mxu0 %v916_v1 }
  0x45   : > { %866 = vmatpush3.bf16.msra.mxu0 %v906_v40 }
  0x46   : > { %867 = vmatprep.subr.bf16.mxu0 %v916_v1 }
  0x49   : > { %868 = vmatpush3.bf16.msra.mxu0 %v907_v41 }
  0x4c   : > { %870 = vmatmul.mubr.bf16.vlgmr.msra.gmra.mxu0 %v478_v44 }
  0xec   : > { %v360_v45 = vpop.f32.mrf.mxu0 }
  0xed   : > { %v449_v46 = vpop.f32.mrf.mxu1 }
  0xee   : > { %v831_v47 = vpop.f32.mrf.mxu0  ;;  %v450_v54 = vadd.f32 %v449_v46, %v360_v45 }
  0xef   : > { %v851_v48 = vpop.f32.mrf.mxu1 }
  0xf0   : > { %v363_v49 = vpop.f32.mrf.mxu0 }
  0xf1   : > { %v452_v50 = vpop.f32.mrf.mxu1 }
  0xf2   : > { %v832_v51 = vpop.f32.mrf.mxu0  ;;  %v453_v56 = vadd.f32 %v452_v50, %v363_v49 }
  0xf3   : > { %v852_v52 = vpop.f32.mrf.mxu1 }
 0x10c   : > { %v562_v53 = vpop.f32.mrf.mxu0 }
 0x10d   : > { %v569_v57 = vadd.f32 %v562_v53, %v450_v54 }
 0x10e   : > { %v871_v55 = vpop.f32.mrf.mxu0 }
 0x10f   : > { %v589_v61 = vmul.f32 %v569_v57, %v569_v57 }
 0x110   : > { %v565_v58 = vpop.f32.mrf.mxu0 }
 0x111   : > { %v570_v59 = vadd.f32 %v565_v58, %v453_v56 }
 0x112   : > { %v872_v60 = vpop.f32.mrf.mxu0 }
 0x113   : > { %v784_v62 = vpack.c.bf16 %v570_v59, %v569_v57  ;;  %v581_v63 = vadd.f32 %v570_v59, %v569_v57  ;;  %v590_v0 = vmul.f32 %v570_v59, %v570_v59 }
 0x115   : > { %785 = vst [vmem:[%s208_s24] sm:$0xff] %v784_v62   ;;  %v582_v1 = vrot.slane %v581_v63, 4  ;;  %v591_v2 = vadd.f32 %v590_v0, %v589_v61 }
 0x117   : > { %v583_v3 = vadd.f32 %v582_v1, %v581_v63  ;;  %v592_v4 = vrot.slane %v591_v2, 4 }
 0x119   : > { %v584_v5 = vrot.slane %v583_v3, 2  ;;  %v593_v6 = vadd.f32 %v592_v4, %v591_v2 }
 0x11b   : > { %v585_v7 = vadd.f32 %v584_v5, %v583_v3  ;;  %v594_v8 = vrot.slane %v593_v6, 2 }
 0x11d   : > { %v586_v9 = vrot.slane %v585_v7, 1  ;;  %v595_v10 = vadd.f32 %v594_v8, %v593_v6 }
 0x11f   : > { %v587_v11 = vadd.f32 %v586_v9, %v585_v7  ;;  %v596_v12 = vrot.slane %v595_v10, 1 }
 0x121   : > { %588 = vst [vmem:[%s211_s27] sm:$0x1] %v587_v11  ;;  %v597_v13 = vadd.f32 %v596_v12, %v595_v10 }
 0x123   : > { %598 = vst [vmem:[%s214_s30] sm:$0x1] %v597_v13 }
 0x124 PF: > { %s15_s15 = sadd.s32 1, %s914_s15  }
 0x125   : > { %p12_p4 = scmp.ge.s32.totalorder %s15_s15, 4  }
 0x127   :  { %14 = sbr.rel (!%p12_p4) target bundleno = 1 (0x1), region = 84 }

// kernel: tile.23
= control target key start
LH: loop header
LB: loop body
LE: loop exit
PB: predicated region body
PF: predicated region fallthrough
CT: control target
= control target key end

     0   :  { %s28_s0 = inlined_call_operand.vmem [shape: f32[8], index: 0, kind: input, shape index: {}]   ;;  %s29_s1 = inlined_call_operand.vmem [shape: f32[16,8], index: 1, kind: output, shape index: {}]  }
   0x1   :  { %v4_v0 = vld [vmem:[%s28_s0] ss:$0 sm:$0xff] }
   0x2   :  { %5 = vst [vmem:[%s29_s1] sm:$0xff] %v4_v0  ;;  %8 = vst [vmem:[%s29_s1 + $0x8] sm:$0xff] %v4_v0 }

// kernel: tile.24
= control target key start
LH: loop header
LB: loop body
LE: loop exit
PB: predicated region body
PF: predicated region fallthrough
CT: control target
= control target key end

     0   :  { %s133_s10 = smov 120   ;;  %s134_s11 = smov 104   ;;  %vm3_vm0 = vcmask 64512   ;;  %vm9_vm1 = vcmask 1048512   ;;  %vm15_vm2 = vcmask 982912   ;;  %vm21_vm3 = vcmask 917312   ;;  %s209_s0 = inlined_call_operand.vmem [shape: f32[16,8], index: 0, kind: input, shape index: {}]   ;;  %s210_s1 = inlined_call_operand.vmem [shape: f32[1,128], index: 1, kind: output, shape index: {}]  }
   0x1   :  { %v103_v0 = vld [vmem:[%s209_s0 + $0xf] sm:$0x1]   ;;  %v105_v1 = vld [vmem:[%s209_s0 + $0xd] sm:$0x1]   ;;  %v104_v2 = vld [vmem:[%s209_s0 + $0xe] sm:$0x1]  }
   0x2   :  { %7 = vrot.lane.b32.xlu0 %v103_v0, %s133_s10  ;;  %19 = vrot.lane.b32.xlu1 %v105_v1, %s134_s11  ;;  %v106_v3 = vld [vmem:[%s209_s0 + $0xc] sm:$0x1]   ;;  %s135_s16 = smov 112   ;;  %s136_s17 = smov 96   ;;  %v107_v4 = vld [vmem:[%s209_s0 + $0xb] sm:$0x1]  }
   0x3   :  { %v108_v5 = vld [vmem:[%s209_s0 + $0xa] sm:$0x1]   ;;  %v2_v6 = vld [vmem:[%s209_s0] sm:$0x1]   ;;  %s137_s24 = smov 88   ;;  %s138_s25 = smov 80  }
   0x4   :  { %4 = vst.msk [vmem:[#allocation0] sm:$0x1] %vm3_vm0, %v2_v6   ;;  %v109_v7 = vld [vmem:[%s209_s0 + $0x9] sm:$0x1]   ;;  %v110_v8 = vld [vmem:[%s209_s0 + $0x8] sm:$0x1]  }
   0x5   :  { %s139_s30 = smov 72   ;;  %s140_s2 = smov 64   ;;  %v111_v9 = vld [vmem:[%s209_s0 + $0x7] sm:$0x1]   ;;  %v112_v10 = vld [vmem:[%s209_s0 + $0x6] sm:$0x1]  }
   0x6   :  { %13 = vrot.lane.b32.xlu0 %v104_v2, %s135_s16  ;;  %25 = vrot.lane.b32.xlu1 %v106_v3, %s136_s17  ;;  %s141_s7 = smov 56   ;;  %s142_s8 = smov 48   ;;  %v113_v11 = vld [vmem:[%s209_s0 + $0x5] sm:$0x1]   ;;  %v114_v12 = vld [vmem:[%s209_s0 + $0x4] sm:$0x1]  }
   0x7   :  { %s143_s13 = smov 40   ;;  %s144_s14 = smov 32   ;;  %v115_v13 = vld [vmem:[%s209_s0 + $0x3] sm:$0x1]   ;;  %v116_v14 = vld [vmem:[%s209_s0 + $0x2] sm:$0x1]  }
   0x8   :  { %s145_s19 = smov 24   ;;  %s146_s20 = smov 16   ;;  %v117_v15 = vld [vmem:[%s209_s0 + $0x1] sm:$0x1]   ;;  %vm27_vm4 = vcmask 851712   ;;  %vm33_vm5 = vcmask 786112  }
   0x9   :  { %s147_s0 = smov 8   ;;  %vm39_vm6 = vcmask 720512   ;;  %vm45_vm7 = vcmask 654912   ;;  %vm51_vm8 = vcmask 589312   ;;  %vm57_vm9 = vcmask 523712  }
   0xa   :  { %31 = vrot.lane.b32.xlu0 %v107_v4, %s137_s24  ;;  %37 = vrot.lane.b32.xlu1 %v108_v5, %s138_s25  ;;  %vm63_vm10 = vcmask 458112   ;;  %vm69_vm11 = vcmask 392512   ;;  %vm75_vm12 = vcmask 326912   ;;  %vm81_vm13 = vcmask 261312  }
   0xb   :  { %vm87_vm14 = vcmask 195712   ;;  %vm93_vm15 = vcmask 130112  }
   0xe   :  { %43 = vrot.lane.b32.xlu0 %v109_v7, %s139_s30  ;;  %49 = vrot.lane.b32.xlu1 %v110_v8, %s140_s2 }
  0x12   :  { %55 = vrot.lane.b32.xlu0 %v111_v9, %s141_s7  ;;  %61 = vrot.lane.b32.xlu1 %v112_v10, %s142_s8 }
  0x16   :  { %67 = vrot.lane.b32.xlu0 %v113_v11, %s143_s13  ;;  %73 = vrot.lane.b32.xlu1 %v114_v12, %s144_s14 }
  0x1a   :  { %79 = vrot.lane.b32.xlu0 %v115_v13, %s145_s19  ;;  %85 = vrot.lane.b32.xlu1 %v116_v14, %s146_s20 }
  0x1e   :  { %91 = vrot.lane.b32.xlu0 %v117_v15, %s147_s0 }
  0x74   :  { %v8_v16 = vpop.permute.xlu0 %7   ;;  %v20_v17 = vpop.permute.xlu1 %19  }
  0x75   :  { %10 = vst.msk [vmem:[#allocation0] sm:$0x1] %vm9_vm1, %v8_v16  }
  0x78   :  { %v14_v18 = vpop.permute.xlu0 %13   ;;  %v26_v19 = vpop.permute.xlu1 %25  }
  0x79   :  { %16 = vst.msk [vmem:[#allocation0] sm:$0x1] %vm15_vm2, %v14_v18  }
  0x7a   :  { %22 = vst.msk [vmem:[#allocation0] sm:$0x1] %vm21_vm3, %v20_v17  }
  0x7b   :  { %28 = vst.msk [vmem:[#allocation0] sm:$0x1] %vm27_vm4, %v26_v19  }
  0x7c   :  { %v32_v20 = vpop.permute.xlu0 %31   ;;  %v38_v21 = vpop.permute.xlu1 %37  }
  0x7d   :  { %34 = vst.msk [vmem:[#allocation0] sm:$0x1] %vm33_vm5, %v32_v20  }
  0x7e   :  { %40 = vst.msk [vmem:[#allocation0] sm:$0x1] %vm39_vm6, %v38_v21  }
  0x80   :  { %v44_v22 = vpop.permute.xlu0 %43   ;;  %v50_v23 = vpop.permute.xlu1 %49  }
  0x81   :  { %46 = vst.msk [vmem:[#allocation0] sm:$0x1] %vm45_vm7, %v44_v22  }
  0x82   :  { %52 = vst.msk [vmem:[#allocation0] sm:$0x1] %vm51_vm8, %v50_v23  }
  0x84   :  { %v56_v24 = vpop.permute.xlu0 %55   ;;  %v62_v25 = vpop.permute.xlu1 %61  }
  0x85   :  { %58 = vst.msk [vmem:[#allocation0] sm:$0x1] %vm57_vm9, %v56_v24  }
  0x86   :  { %64 = vst.msk [vmem:[#allocation0] sm:$0x1] %vm63_vm10, %v62_v25  }
  0x88   :  { %v68_v26 = vpop.permute.xlu0 %67   ;;  %v74_v27 = vpop.permute.xlu1 %73  }
  0x89   :  { %70 = vst.msk [vmem:[#allocation0] sm:$0x1] %vm69_vm11, %v68_v26  }
  0x8a   :  { %76 = vst.msk [vmem:[#allocation0] sm:$0x1] %vm75_vm12, %v74_v27  }
  0x8c   :  { %v80_v28 = vpop.permute.xlu0 %79   ;;  %v86_v29 = vpop.permute.xlu1 %85  }
  0x8d   :  { %82 = vst.msk [vmem:[#allocation0] sm:$0x1] %vm81_vm13, %v80_v28  }
  0x8e   :  { %88 = vst.msk [vmem:[#allocation0] sm:$0x1] %vm87_vm14, %v86_v29  }
  0x90   :  { %v92_v30 = vpop.permute.xlu0 %91  }
  0x91   :  { %94 = vst.msk [vmem:[#allocation0] sm:$0x1] %vm93_vm15, %v92_v30  }
  0x98   :  { %v99_v31 = vld [vmem:[#allocation0] sm:$0x1] }
  0x99   :  { %102 = vst [vmem:[%s210_s1] sm:$0x1] %v99_v31 }

// kernel: basic_block_forward.4
= control target key start
LH: loop header
LB: loop body
LE: loop exit
PB: predicated region body
PF: predicated region fallthrough
CT: control target
= control target key end

     0   :  { %s1036_s21 = smov 0   ;;  %s1176_s0 = inlined_call_operand.vmem [shape: bf16[2,16,128], index: 0, kind: input, shape index: {}]   ;;  %s1177_s1 = inlined_call_operand.vmem [shape: f32[1,128], index: 1, kind: input, shape index: {}]   ;;  %s1178_s2 = inlined_call_operand.vmem [shape: f32[1,128], index: 2, kind: input, shape index: {}]   ;;  %s1179_s3 = inlined_call_operand.vmem [shape: bf16[3,128,128], index: 3, kind: input, shape index: {}]   ;;  %s1180_s4 = inlined_call_operand.vmem [shape: bf16[2,16,128], index: 4, kind: output, shape index: {0}]   ;;  %s1181_s5 = inlined_call_operand.vmem [shape: f32[2,1,128], index: 5, kind: output, shape index: {1}]   ;;  %s1182_s6 = inlined_call_operand.vmem [shape: f32[2,1,128], index: 6, kind: output, shape index: {2}]  }
   0x1 LB: > { %s780_s22 = sadd.s32 4294967295, %s996_s21   ;;  %p784_p0 = scmp.ge.s32.totalorder %s996_s21, 1  ;;  %s996_s21 = sphi %s1036_s21, %s17_s21  }
   0x2   : > { %p217_p1 = scmp.lt.s32.totalorder %s996_s21, 3 }
   0x4   : > { %p218_p2 = pnand %p784_p0, %p217_p1 }
   0x5   : > { %p253_p3 = scmp.lt.s32.totalorder (!%p218_p2), %s780_s22, 1 }
   0x6   : > { %221 = sbr.rel (%p218_p2) target bundleno = 292 (0x124), region = 36 }
   0xb   : > { %v966_v0 = vld [vmem:[%s1179_s3 + $0x78] sm:$0xff]   ;;  %v998_v1 = vmov 0.0   ;;  %v968_v3 = vld [vmem:[%s1179_s3 + $0x70] sm:$0xff]   ;;  %vm999_vm0 = vmmov 0   ;;  %v970_v5 = vld [vmem:[%s1179_s3 + $0x68] sm:$0xff]   ;;  %s1184_s22 = smov (!%p253_p3, %s780_s22), 1 }
   0xc   : > { %895 = vmatprep.subr.bf16.mxu0 %v998_v1  ;;  %915 = vmatprep.subr.bf16.mxu1 %v998_v1  ;;  %v967_v2 = vld [vmem:[%s1179_s3 + $0x38] sm:$0xff]   ;;  %v969_v4 = vld [vmem:[%s1179_s3 + $0x30] sm:$0xff]   ;;  %v971_v6 = vld [vmem:[%s1179_s3 + $0x28] sm:$0xff]   ;;  %s855_s13 = sshll.u32 %s1184_s22, 3  ;;  %vm296_vm1 = vcmask 1040384   ;;  %vm1000_vm3 = vmmov 1   ;;  %s265_s17 = scalar_lea.vmem %s1181_s5, %s1184_s22 }
   0xd   : > { %896 = vmatpush3.bf16.msra.mxu0 %v966_v0  ;;  %911 = vmatprep.mubr.msk.bf16.mxu0 %vm999_vm0, %v998_v1  ;;  %v972_v7 = vld [vmem:[%s1179_s3 + $0x60] sm:$0xff]   ;;  %s257_s18 = scalar_lea.vmem %s1176_s0, %s855_s13  ;;  %v974_v9 = vld [vmem:[%s1179_s3 + $0x58] sm:$0xff]   ;;  %v976_v15 = vld [vmem:[%s1179_s3 + $0x50] sm:$0xff]   ;;  %vm340_vm5 = vsmask.f32 7424  ;;  %vm551_vm6 = vcmask 1046528   ;;  %s262_s15 = scalar_lea.vmem %s1180_s4, %s855_s13 }
   0xe   : > { %916 = vmatpush3.bf16.msra.mxu1 %v967_v2  ;;  %897 = vmatprep.subr.bf16.mxu0 %v998_v1  ;;  %v973_v8 = vld [vmem:[%s1179_s3 + $0x20] sm:$0xff]   ;;  %v975_v10 = vld [vmem:[%s1179_s3 + $0x18] sm:$0xff]   ;;  %v977_v17 = vld [vmem:[%s1179_s3 + $0x10] sm:$0xff]   ;;  %s268_s20 = scalar_lea.vmem %s1182_s6, %s1184_s22 }
   0xf   : > { %917 = vmatprep.subr.bf16.mxu1 %v998_v1  ;;  %931 = vmatprep.mubr.msk.bf16.mxu1 %vm999_vm0, %v998_v1  ;;  %v860_v11 = vld [vmem:[%s257_s18] sm:$0xff]   ;;  %v978_v22 = vld [vmem:[%s1179_s3 + $0x48] sm:$0xff]   ;;  %vm823_vm2 = vmneg %vm296_vm1 }
  0x10   : > { %v789_v12 = vld [vmem:[%s1177_s1] ss:$0 sm:$0xff]  ;;  %v861_v13 = vunpack.c.l.bf16 %v860_v11  ;;  %v862_v14 = vunpack.c.h.bf16 %v860_v11  ;;  %v979_v23 = vld [vmem:[%s1179_s3 + $0x8] sm:$0xff]   ;;  %vm824_vm4 = vmpackc.low %vm1000_vm3, %vm823_vm2 }
  0x11   : > { %898 = vmatpush3.bf16.msra.mxu0 %v968_v3  ;;  %v790_v16 = vld [vmem:[%s1178_s2] ss:$0 sm:$0xff]  ;;  %v982_v42 = vld [vmem:[%s1179_s3 + $0xb8] sm:$0xff]   ;;  %v983_v44 = vld [vmem:[%s1179_s3 + $0xb0] sm:$0xff]  }
  0x12   : > { %918 = vmatpush3.bf16.msra.mxu1 %v969_v4  ;;  %899 = vmatprep.subr.bf16.mxu0 %v998_v1  ;;  %v281_v18 = vmul.f32 %v861_v13, %v789_v12  ;;  %v282_v19 = vmul.f32 %v862_v14, %v789_v12  ;;  %v980_v28 = vld [vmem:[%s1179_s3 + $0x40] sm:$0xff]   ;;  %v984_v45 = vld [vmem:[%s1179_s3 + $0xa8] sm:$0xff]   ;;  %v986_v47 = vld [vmem:[%s1179_s3 + $0x98] sm:$0xff]  }
  0x13   : > { %919 = vmatprep.subr.bf16.mxu1 %v998_v1  ;;  %v981_v29 = vld [vmem:[%s1179_s3] sm:$0xff]   ;;  %v987_v48 = vld [vmem:[%s1179_s3 + $0x90] sm:$0xff]   ;;  %v988_v49 = vld [vmem:[%s1179_s3 + $0x88] sm:$0xff]  }
  0x14   : > { %v290_v20 = vadd.f32 %v790_v16, %v281_v18  ;;  %v291_v21 = vadd.f32 %v790_v16, %v282_v19  ;;  %v985_v46 = vld [vmem:[%s1179_s3 + $0xa0] sm:$0xff]  }
  0x15   : > { %900 = vmatpush3.bf16.msra.mxu0 %v970_v5  ;;  %v989_v50 = vld [vmem:[%s1179_s3 + $0x80] sm:$0xff]  }
  0x16   : > { %920 = vmatpush3.bf16.msra.mxu1 %v971_v6  ;;  %901 = vmatprep.subr.bf16.mxu0 %v998_v1  ;;  %v292_v24 = vmax.f32 %v290_v20, 0.0  ;;  %v293_v25 = vmax.f32 %v291_v21, 0.0 }
  0x17   : > { %921 = vmatprep.subr.bf16.mxu1 %v998_v1 }
  0x18   : > { %v297_v26 = vrot.slane %v292_v24, 7  ;;  %v298_v27 = vrot.slane %v293_v25, 7 }
  0x19   : > { %902 = vmatpush3.bf16.msra.mxu0 %v972_v7 }
  0x1a   : > { %922 = vmatpush3.bf16.msra.mxu1 %v973_v8  ;;  %903 = vmatprep.subr.bf16.mxu0 %v998_v1  ;;  %v299_v30 = vsel %vm296_vm1, %v297_v26, %v298_v27  ;;  %v303_v31 = vsel %vm296_vm1, 0.0, %v297_v26  ;;  %v304_v32 = vsel %vm296_vm1, %v298_v27, 0.0 }
  0x1b   : > { %923 = vmatprep.subr.bf16.mxu1 %v998_v1  ;;  %v305_v33 = vpack.c.bf16 %v299_v30, %v303_v31  ;;  %v306_v34 = vpack.c.bf16 %v304_v32, %v304_v32  ;;  %v825_v38 = vpack.c.bf16 %v299_v30, %v297_v26 }
  0x1d   : > { %904 = vmatpush3.bf16.msra.mxu0 %v974_v9  ;;  %v342_v35 = vshrl.u32 %v305_v33, 16  ;;  %v344_v36 = vshll.u32 %v305_v33, 16  ;;  %v349_v37 = vshll.u32 %v306_v34, 16  ;;  %v552_v51 = vrot.slane %v305_v33, 1 }
  0x1e   : > { %924 = vmatpush3.bf16.msra.mxu1 %v975_v10  ;;  %905 = vmatprep.subr.bf16.mxu0 %v998_v1  ;;  %v553_v52 = vrot.slane %v306_v34, 1 }
  0x1f   : > { %925 = vmatprep.subr.bf16.mxu1 %v998_v1  ;;  %v346_v39 = vrot.slane %v344_v36, 1  ;;  %v351_v40 = vrot.slane %v349_v37, 1 }
  0x20   : > { %v554_v53 = vsel %vm551_vm6, %v552_v51, %v553_v52 }
  0x21   : > { %906 = vmatpush3.bf16.msra.mxu0 %v976_v15  ;;  %v347_v41 = vor.u32 %v346_v39, %v342_v35 }
  0x22   : > { %926 = vmatpush3.bf16.msra.mxu1 %v977_v17  ;;  %907 = vmatprep.subr.bf16.mxu0 %v998_v1 }
  0x23   : > { %927 = vmatprep.subr.bf16.mxu1 %v998_v1  ;;  %v352_v43 = vsel %vm340_vm5, %v347_v41, %v351_v40 }
  0x25   : > { %908 = vmatpush3.bf16.msra.mxu0 %v978_v22 }
  0x26   : > { %928 = vmatpush3.bf16.msra.mxu1 %v979_v23  ;;  %909 = vmatprep.subr.bf16.mxu0 %v998_v1 }
  0x27   : > { %929 = vmatprep.subr.bf16.mxu1 %v998_v1 }
  0x29   : > { %910 = vmatpush3.bf16.msra.mxu0 %v980_v28 }
  0x2a   : > { %930 = vmatpush3.bf16.msra.mxu1 %v981_v29  ;;  %935 = vmatprep.subr.bf16.mxu0 %v998_v1 }
  0x2c   : > { %912 = vmatmul.mubr.bf16.vlgmr.msra.gmra.mxu0 %v352_v43 }
  0x2d   : > { %932 = vmatmul.mubr.msk.bf16.vlgmr.msra.gmra.mxu1 %vm824_vm4, %v825_v38  ;;  %936 = vmatpush3.bf16.msra.mxu0 %v982_v42 }
  0x2e   : > { %951 = vmatprep.mubr.msk.bf16.mxu0 %vm999_vm0, %v998_v1  ;;  %937 = vmatprep.subr.bf16.mxu0 %v998_v1 }
  0x31   : > { %938 = vmatpush3.bf16.msra.mxu0 %v983_v44 }
  0x32   : > { %939 = vmatprep.subr.bf16.mxu0 %v998_v1 }
  0x35   : > { %940 = vmatpush3.bf16.msra.mxu0 %v984_v45 }
  0x36   : > { %941 = vmatprep.subr.bf16.mxu0 %v998_v1 }
  0x39   : > { %942 = vmatpush3.bf16.msra.mxu0 %v985_v46 }
  0x3a   : > { %943 = vmatprep.subr.bf16.mxu0 %v998_v1 }
  0x3d   : > { %944 = vmatpush3.bf16.msra.mxu0 %v986_v47 }
  0x3e   : > { %945 = vmatprep.subr.bf16.mxu0 %v998_v1 }
  0x41   : > { %946 = vmatpush3.bf16.msra.mxu0 %v987_v48 }
  0x42   : > { %947 = vmatprep.subr.bf16.mxu0 %v998_v1 }
  0x45   : > { %948 = vmatpush3.bf16.msra.mxu0 %v988_v49 }
  0x46   : > { %949 = vmatprep.subr.bf16.mxu0 %v998_v1 }
  0x49   : > { %950 = vmatpush3.bf16.msra.mxu0 %v989_v50 }
  0x4c   : > { %952 = vmatmul.mubr.bf16.vlgmr.msra.gmra.mxu0 %v554_v53 }
  0xec   : > { %v436_v56 = vpop.f32.mrf.mxu0 }
  0xed   : > { %v525_v54 = vpop.f32.mrf.mxu1 }
  0xee   : > { %v913_v58 = vpop.f32.mrf.mxu0  ;;  %v526_v63 = vadd.f32 %v525_v54, %v436_v56 }
  0xef   : > { %v933_v55 = vpop.f32.mrf.mxu1 }
  0xf0   : > { %v439_v60 = vpop.f32.mrf.mxu0 }
  0xf1   : > { %v528_v57 = vpop.f32.mrf.mxu1 }
  0xf2   : > { %v914_v61 = vpop.f32.mrf.mxu0  ;;  %v529_v2 = vadd.f32 %v528_v57, %v439_v60 }
  0xf3   : > { %v934_v59 = vpop.f32.mrf.mxu1 }
 0x10c   : > { %v638_v62 = vpop.f32.mrf.mxu0 }
 0x10d   : > { %v645_v3 = vadd.f32 %v638_v62, %v526_v63 }
 0x10e   : > { %v953_v0 = vpop.f32.mrf.mxu0 }
 0x10f   : > { %v665_v6 = vmul.f32 %v645_v3, %v645_v3 }
 0x110   : > { %v641_v4 = vpop.f32.mrf.mxu0 }
 0x111   : > { %v646_v1 = vadd.f32 %v641_v4, %v529_v2 }
 0x112   : > { %v954_v5 = vpop.f32.mrf.mxu0 }
 0x113   : > { %v866_v7 = vpack.c.bf16 %v646_v1, %v645_v3  ;;  %v657_v8 = vadd.f32 %v646_v1, %v645_v3  ;;  %v666_v9 = vmul.f32 %v646_v1, %v646_v1 }
 0x115   : > { %867 = vst [vmem:[%s262_s15] sm:$0xff] %v866_v7   ;;  %v658_v10 = vrot.slane %v657_v8, 4  ;;  %v667_v11 = vadd.f32 %v666_v9, %v665_v6 }
 0x117   : > { %v659_v12 = vadd.f32 %v658_v10, %v657_v8  ;;  %v668_v13 = vrot.slane %v667_v11, 4 }
 0x119   : > { %v660_v14 = vrot.slane %v659_v12, 2  ;;  %v669_v15 = vadd.f32 %v668_v13, %v667_v11 }
 0x11b   : > { %v661_v16 = vadd.f32 %v660_v14, %v659_v12  ;;  %v670_v17 = vrot.slane %v669_v15, 2 }
 0x11d   : > { %v662_v18 = vrot.slane %v661_v16, 1  ;;  %v671_v19 = vadd.f32 %v670_v17, %v669_v15 }
 0x11f   : > { %v663_v20 = vadd.f32 %v662_v18, %v661_v16  ;;  %v672_v21 = vrot.slane %v671_v19, 1 }
 0x121   : > { %664 = vst [vmem:[%s265_s17] sm:$0x1] %v663_v20  ;;  %v673_v22 = vadd.f32 %v672_v21, %v671_v19 }
 0x123   : > { %674 = vst [vmem:[%s268_s20] sm:$0x1] %v673_v22 }
 0x124 PF: > { %s17_s21 = sadd.s32 1, %s996_s21  }
 0x125   : > { %p14_p4 = scmp.ge.s32.totalorder %s17_s21, 4  }
 0x127   :  { %16 = sbr.rel (!%p14_p4) target bundleno = 1 (0x1), region = 92 }

// kernel: basic_block_forward.5
= control target key start
LH: loop header
LB: loop body
LE: loop exit
PB: predicated region body
PF: predicated region fallthrough
CT: control target
= control target key end

     0   :  { %s139_s0 = inlined_call_operand.vmem [shape: bf16[32,128], index: 0, kind: input, shape index: {}]   ;;  %s140_s1 = inlined_call_operand.vmem [shape: f32[1,128], index: 1, kind: input, shape index: {}]   ;;  %s141_s2 = inlined_call_operand.vmem [shape: f32[1,128], index: 2, kind: input, shape index: {}]   ;;  %s142_s3 = inlined_call_operand.vmem [shape: f32[32,128], index: 3, kind: input, shape index: {}]   ;;  %s143_s4 = inlined_call_operand.vmem [shape: f32[32,128], index: 4, kind: output, shape index: {}]  }
   0x1   :  { %v70_v0 = vld [vmem:[%s139_s0] sm:$0xff]   ;;  %v77_v4 = vld [vmem:[%s139_s0 + $0x8] sm:$0xff]   ;;  %v49_v16 = vld [vmem:[%s142_s3 + $0x10] sm:$0xff] }
   0x2   :  { %v67_v1 = vld [vmem:[%s140_s1] ss:$0 sm:$0xff]  ;;  %v71_v2 = vunpack.c.l.bf16 %v70_v0  ;;  %v72_v3 = vunpack.c.h.bf16 %v70_v0  ;;  %v75_v6 = vunpack.c.l.bf16 %v77_v4  ;;  %v76_v7 = vunpack.c.h.bf16 %v77_v4  ;;  %v48_v11 = vld [vmem:[%s142_s3 + $0x8] sm:$0xff]  ;;  %v50_v17 = vld [vmem:[%s142_s3 + $0x18] sm:$0xff] }
   0x3   :  { %v68_v5 = vld [vmem:[%s141_s2] ss:$0 sm:$0xff] }
   0x4   :  { %v32_v8 = vmul.f32 %v71_v2, %v67_v1  ;;  %v33_v9 = vmul.f32 %v72_v3, %v67_v1  ;;  %v47_v10 = vld [vmem:[%s142_s3] sm:$0xff]  ;;  %v34_v12 = vmul.f32 %v75_v6, %v67_v1  ;;  %v35_v13 = vmul.f32 %v76_v7, %v67_v1 }
   0x6   :  { %v43_v14 = vadd.f32 %v68_v5, %v32_v8  ;;  %v44_v15 = vadd.f32 %v68_v5, %v33_v9  ;;  %v45_v18 = vadd.f32 %v68_v5, %v34_v12  ;;  %v46_v19 = vadd.f32 %v68_v5, %v35_v13 }
   0x8   :  { %v51_v20 = vadd.f32 %v47_v10, %v43_v14  ;;  %v52_v21 = vadd.f32 %v48_v11, %v44_v15  ;;  %v53_v22 = vadd.f32 %v49_v16, %v45_v18  ;;  %v54_v23 = vadd.f32 %v50_v17, %v46_v19 }
   0xa   :  { %v55_v24 = vmax.f32 %v51_v20, 0.0  ;;  %v56_v25 = vmax.f32 %v52_v21, 0.0  ;;  %v57_v26 = vmax.f32 %v53_v22, 0.0  ;;  %v58_v27 = vmax.f32 %v54_v23, 0.0 }
   0xc   :  { %59 = vst [vmem:[%s143_s4] sm:$0xff] %v55_v24  ;;  %60 = vst [vmem:[%s143_s4 + $0x8] sm:$0xff] %v56_v25 }
   0xd   :  { %61 = vst [vmem:[%s143_s4 + $0x10] sm:$0xff] %v57_v26  ;;  %62 = vst [vmem:[%s143_s4 + $0x18] sm:$0xff] %v58_v27 }

</bundles_post_ra>
